<compile_context>
chip_gen: v6e
topology: v6e:2x2x1
jax: 0.10.0
libtpu: 0.0.40
codegen_flags: <defaults>
</compile_context>

<pallas_src>
import functools

import jax
import jax.numpy as jnp
from jax.experimental import pallas as pl
from jax.experimental.pallas import tpu as pltpu

_INV_SQRT2 = 0.7071067811865476


def _channel_attention_kernel(valid_last, x_ref, wd_ref, bd_ref, wu_ref,
                              bu_ref, o_ref, acc_ref):
    # x_ref:  (1, C, S_TILE)   native dtype (current spatial tile)
    # wd_ref: (Cr, C)  bd_ref: (1, Cr)   down-projection (PyTorch layout)
    # wu_ref: (C, Cr)  bu_ref: (1, C)    up-projection   (PyTorch layout)
    # o_ref:  (1, 1, C)
    # acc_ref: VMEM scratch (1, C) float32 -- running max across spatial tiles
    # valid_last: static int or None -- valid lanes in the LAST spatial tile
    #   (None => every tile is fully valid, no masking anywhere).
    k = pl.program_id(1)
    last_k = pl.num_programs(1) - 1

    @pl.when(k == 0)
    def _init():
        acc_ref[...] = jnp.full(acc_ref.shape, -jnp.inf, dtype=acc_ref.dtype)

    def _accumulate(tile):
        tile_max = jnp.max(tile, axis=-1)                        # (1, C)
        acc_ref[...] = jnp.maximum(acc_ref[...],
                                   tile_max.astype(acc_ref.dtype))

    if valid_last is None:
        _accumulate(x_ref[...])
    else:
        # Only the last spatial tile is ragged; mask it in-kernel (one VPU
        # select on that tile only) instead of padding x in HBM.
        @pl.when(k != last_k)
        def _full_tile():
            _accumulate(x_ref[...])

        @pl.when(k == last_k)
        def _ragged_tile():
            lane = jax.lax.broadcasted_iota(jnp.int32, x_ref.shape, 2)
            neg_inf = jnp.array(-jnp.inf, dtype=x_ref.dtype)
            _accumulate(jnp.where(lane < valid_last, x_ref[...], neg_inf))

    @pl.when(k == last_k)
    def _finalize():
        pooled = acc_ref[...]                                    # (1, C) f32

        # down: contract pooled's C against w_down's C (PyTorch (Cr, C) kept
        # lane-dense; no transpose needed).
        h = jax.lax.dot_general(
            pooled, wd_ref[...].astype(jnp.float32),
            dimension_numbers=(((1,), (1,)), ((), ())),
            preferred_element_type=jnp.float32)
        h = h + bd_ref[...].astype(jnp.float32)                  # (1, Cr)

        # exact (erf) GELU, matching nn.GELU() default.
        h = 0.5 * h * (1.0 + jax.lax.erf(h * _INV_SQRT2))

        # up: contract h's Cr against w_up's Cr (PyTorch (C, Cr) layout).
        out = jax.lax.dot_general(
            h, wu_ref[...].astype(jnp.float32),
            dimension_numbers=(((1,), (1,)), ((), ())),
            preferred_element_type=jnp.float32)
        out = out + bu_ref[...].astype(jnp.float32)              # (1, C)

        o_ref[...] = out.reshape(o_ref.shape).astype(o_ref.dtype)


def _round_up(v, m):
    return (v + m - 1) // m * m


@functools.partial(jax.jit, static_argnames=("max_spatial_tile",))
def channel_attention(x, w_down, b_down, w_up, b_up, *, max_spatial_tile=None):
    """x: (B, C, H, W).  w_down: (Cr, C), b_down: (Cr,), w_up: (C, Cr),
    b_up: (C,)  (PyTorch nn.Linear weight convention).  Returns (B, C, 1, 1)."""
    B, C, H, W = x.shape
    Cr = w_down.shape[0]
    S = H * W

    x_flat = x.reshape(B, C, S)
    itemsize = jnp.dtype(x.dtype).itemsize
    lane_bytes = max(1, C * itemsize)

    # --- spatial-tile heuristic -------------------------------------------
    # One input block is C strided DMA chunks of s_tile*itemsize bytes:
    #  * ~8 MiB blocks amortize the ~0.35us per-grid-step overhead and keep
    #    double-buffered input (~16 MiB) comfortably inside every chip's VMEM
    #    once vmem_limit_bytes is raised;
    #  * keep s_tile >= 512 lanes so per-channel chunks stay >= 2 KiB (f32);
    #  * hard-cap one block at 16 MiB so double-buffering fits v7x (64 MiB).
    budget_bytes = 8 << 20
    max_lanes = max(512, (budget_bytes // lane_bytes) // 128 * 128)
    if max_spatial_tile is not None:
        max_lanes = min(max_lanes, max(128, (max_spatial_tile // 128) * 128))

    if _round_up(S, 128) <= max_lanes:
        s_tile = S                       # single full-extent tile, no masking
    else:
        s_tile = max_lanes               # multiple of 128; last tile may be ragged
    hard_cap = 16 << 20
    if C * s_tile * itemsize > hard_cap:
        s_tile = max(128, (hard_cap // lane_bytes) // 128 * 128)

    num_s_tiles = pl.cdiv(S, s_tile)
    tail = S - (num_s_tiles - 1) * s_tile
    valid_last = None if tail == s_tile else tail   # static; baked into kernel

    bd = b_down.reshape(1, Cr)
    bu = b_up.reshape(1, C)

    def _nbytes(a):
        return a.size * jnp.dtype(a.dtype).itemsize

    # Declare enough scoped VMEM for the double-buffered blocks + headroom,
    # capped below v7x's 64 MiB physical VMEM per TensorCore.
    need = (2 * C * s_tile * itemsize                                   # input
            + 2 * (_nbytes(w_down) + _nbytes(w_up) + _nbytes(bd) + _nbytes(bu))
            + 2 * C * itemsize                                          # output
            + 4 * C)                                                    # scratch
    vmem_limit = int(min(48 << 20, max(32 << 20, need + (8 << 20))))

    # Advisory cost hint: the op is dominated by the B*C*S HBM read.
    bytes_accessed = int(B * C * S * itemsize
                         + _nbytes(w_down) + _nbytes(w_up)
                         + _nbytes(bd) + _nbytes(bu)
                         + B * C * itemsize)
    cost = pl.CostEstimate(flops=4 * B * C * Cr,
                           transcendentals=B * Cr,
                           bytes_accessed=bytes_accessed)

    kernel = functools.partial(_channel_attention_kernel, valid_last)

    out = pl.pallas_call(
        kernel,
        out_shape=jax.ShapeDtypeStruct((B, 1, C), x.dtype),
        grid=(B, num_s_tiles),
        in_specs=[
            pl.BlockSpec((1, C, s_tile), lambda b, k: (b, 0, k)),
            pl.BlockSpec((Cr, C), lambda b, k: (0, 0)),
            pl.BlockSpec((1, Cr), lambda b, k: (0, 0)),
            pl.BlockSpec((C, Cr), lambda b, k: (0, 0)),
            pl.BlockSpec((1, C), lambda b, k: (0, 0)),
        ],
        out_specs=pl.BlockSpec((1, 1, C), lambda b, k: (b, 0, 0)),
        scratch_shapes=[pltpu.VMEM((1, C), jnp.float32)],
        compiler_params=pltpu.CompilerParams(
            dimension_semantics=("parallel", "arbitrary"),
            vmem_limit_bytes=vmem_limit),
        cost_estimate=cost,
    )(x_flat, w_down, bd, w_up, bu)

    return out.reshape(B, C, 1, 1)


def _reference(x, w_down, b_down, w_up, b_up):
    # Pure-JAX reference mirroring the PyTorch forward.
    pooled = jnp.max(x, axis=(2, 3))                       # (B, C)
    h = pooled @ w_down.T + b_down
    h = 0.5 * h * (1.0 + jax.lax.erf(h * _INV_SQRT2))      # exact GELU
    y = h @ w_up.T + b_up
    return y[:, :, None, None]


def _run_case(key, B, C, H, W, ratio, max_spatial_tile):
    Cr = max(1, C // ratio)
    k_x, k_wd, k_bd, k_wu, k_bu = jax.random.split(key, 5)
    x = jax.random.normal(k_x, (B, C, H, W), dtype=jnp.float32)
    w_down = jax.random.normal(k_wd, (Cr, C), dtype=jnp.float32) * 0.1
    b_down = jax.random.normal(k_bd, (Cr,), dtype=jnp.float32) * 0.1
    w_up = jax.random.normal(k_wu, (C, Cr), dtype=jnp.float32) * 0.1
    b_up = jax.random.normal(k_bu, (C,), dtype=jnp.float32) * 0.1

    out = channel_attention(x, w_down, b_down, w_up, b_up,
                            max_spatial_tile=max_spatial_tile)
    out = jax.block_until_ready(out)
    ref = _reference(x, w_down, b_down, w_up, b_up)
    assert out.shape == (B, C, 1, 1), out.shape
    assert jnp.allclose(out, ref, atol=1e-5, rtol=1e-5), (
        float(jnp.max(jnp.abs(out - ref))))


if __name__ == "__main__":
    key = jax.random.PRNGKey(0)
    k0, k1, k2, k3 = jax.random.split(key, 4)

    # 1) Default tiling (single spatial tile at this small size).
    _run_case(k0, B=2, C=64, H=16, W=16, ratio=16, max_spatial_tile=None)
    # 2) Forced multi-tile spatial reduction (exercises running-max + pl.when).
    _run_case(k1, B=2, C=64, H=16, W=16, ratio=16, max_spatial_tile=128)
    # 3) Non-multiple-of-128 spatial size, single full-extent tile (no mask).
    _run_case(k2, B=2, C=32, H=9, W=9, ratio=16, max_spatial_tile=128)
    # 4) Multi-tile with a ragged last tile (exercises the in-kernel mask).
    _run_case(k3, B=2, C=32, H=13, W=13, ratio=16, max_spatial_tile=128)

    print("KERNEL_OK")
</pallas_src>

<mosaic_0001>
module attributes {stable_mosaic.version = 11 : i64} {
  func.func @_channel_attention_kernel(%arg0: i32, %arg1: i32, %arg2: memref<1x64x256xf32, #tpu.memory_space<vmem>>, %arg3: memref<4x64xf32, #tpu.memory_space<vmem>>, %arg4: memref<1x4xf32, #tpu.memory_space<vmem>>, %arg5: memref<64x4xf32, #tpu.memory_space<vmem>>, %arg6: memref<1x64xf32, #tpu.memory_space<vmem>>, %arg7: memref<1x1x64xf32, #tpu.memory_space<vmem>>, %arg8: memref<1x64xf32, #tpu.memory_space<vmem>>) attributes {dimension_semantics = [#tpu.dimension_semantics<parallel>, #tpu.dimension_semantics<arbitrary>], iteration_bounds = array<i64: 2, 1>, scalar_prefetch = 0 : i64, scratch_operands = 1 : i64, tpu.core_type = #tpu.core_type<tc>, window_params = [{transform_indices = @transform_0, window_bounds = array<i64: 1, 64, 256>}, {pipeline_mode = #tpu.pipeline_mode<synchronous>, transform_indices = @transform_1, window_bounds = array<i64: 4, 64>}, {pipeline_mode = #tpu.pipeline_mode<synchronous>, transform_indices = @transform_2, window_bounds = array<i64: 1, 4>}, {pipeline_mode = #tpu.pipeline_mode<synchronous>, transform_indices = @transform_3, window_bounds = array<i64: 64, 4>}, {pipeline_mode = #tpu.pipeline_mode<synchronous>, transform_indices = @transform_4, window_bounds = array<i64: 1, 64>}, {transform_indices = @transform_5, window_bounds = array<i64: 1, 1, 64>}]} {
    %c0_i32 = arith.constant 0 : i32
    %0 = arith.cmpi eq, %arg1, %c0_i32 : i32
    %1 = arith.extui %0 : i1 to i32
    %c0_i32_0 = arith.constant 0 : i32
    %2 = arith.cmpi ne, %1, %c0_i32_0 : i32
    scf.if %2 {
      %cst_9 = arith.constant 0xFF800000 : f32
      %11 = vector.broadcast %cst_9 : f32 to vector<1x64xf32>
      %c0_10 = arith.constant 0 : index
      %c0_11 = arith.constant 0 : index
      %12 = vector.load %arg8[%c0_10, %c0_11] : memref<1x64xf32, #tpu.memory_space<vmem>>, vector<1x64xf32>
      tpu.vector_store %arg8[%c0_10, %c0_11], %11 {strides = array<i32>} : memref<1x64xf32, #tpu.memory_space<vmem>>, vector<1x64xf32>,
    } else {
    }
    %c0 = arith.constant 0 : index
    %c0_1 = arith.constant 0 : index
    %c0_2 = arith.constant 0 : index
    %3 = vector.load %arg2[%c0, %c0_1, %c0_2] : memref<1x64x256xf32, #tpu.memory_space<vmem>>, vector<1x64x256xf32>
    %cst = arith.constant dense<0xFF800000> : vector<1x64xf32>
    %4 = vector.multi_reduction <maximumf>, %3, %cst [2] : vector<1x64x256xf32> to vector<1x64xf32>
    %c0_3 = arith.constant 0 : index
    %c0_4 = arith.constant 0 : index
    %5 = vector.load %arg8[%c0_3, %c0_4] : memref<1x64xf32, #tpu.memory_space<vmem>>, vector<1x64xf32>
    %6 = arith.maximumf %5, %4 : vector<1x64xf32>
    %c0_5 = arith.constant 0 : index
    %c0_6 = arith.constant 0 : index
    %7 = vector.load %arg8[%c0_5, %c0_6] : memref<1x64xf32, #tpu.memory_space<vmem>>, vector<1x64xf32>
    tpu.vector_store %arg8[%c0_5, %c0_6], %6 {strides = array<i32>} : memref<1x64xf32, #tpu.memory_space<vmem>>, vector<1x64xf32>,
    %c0_i32_7 = arith.constant 0 : i32
    %8 = arith.cmpi eq, %arg1, %c0_i32_7 : i32
    %9 = arith.extui %8 : i1 to i32
    %c0_i32_8 = arith.constant 0 : i32
    %10 = arith.cmpi ne, %9, %c0_i32_8 : i32
    scf.if %10 {
      %c0_9 = arith.constant 0 : index
      %c0_10 = arith.constant 0 : index
      %11 = vector.load %arg8[%c0_9, %c0_10] : memref<1x64xf32, #tpu.memory_space<vmem>>, vector<1x64xf32>
      %c0_11 = arith.constant 0 : index
      %c0_12 = arith.constant 0 : index
      %12 = vector.load %arg3[%c0_11, %c0_12] : memref<4x64xf32, #tpu.memory_space<vmem>>, vector<4x64xf32>
      %cst_13 = arith.constant dense<0.000000e+00> : vector<1x4xf32>
      %13 = tpu.matmul %11, %12, %cst_13 {dimension_numbers = #tpu.dot_dimension_numbers<[1], [1], [0], [0], [0, 0, 1, 0], [], []>} : vector<1x64xf32>, vector<4x64xf32>, vector<1x4xf32> -> vector<1x4xf32>
      %c0_14 = arith.constant 0 : index
      %c0_15 = arith.constant 0 : index
      %14 = vector.load %arg4[%c0_14, %c0_15] : memref<1x4xf32, #tpu.memory_space<vmem>>, vector<1x4xf32>
      %15 = arith.addf %13, %14 : vector<1x4xf32>
      %cst_16 = arith.constant 5.000000e-01 : f32
      %16 = vector.broadcast %cst_16 : f32 to vector<1x4xf32>
      %17 = arith.mulf %16, %15 : vector<1x4xf32>
      %cst_17 = arith.constant 0.707106769 : f32
      %18 = vector.broadcast %cst_17 : f32 to vector<1x4xf32>
      %19 = arith.mulf %15, %18 : vector<1x4xf32>
      %20 = math.erf %19 : vector<1x4xf32>
      %cst_18 = arith.constant 1.000000e+00 : f32
      %21 = vector.broadcast %cst_18 : f32 to vector<1x4xf32>
      %22 = arith.addf %21, %20 : vector<1x4xf32>
      %23 = arith.mulf %17, %22 : vector<1x4xf32>
      %c0_19 = arith.constant 0 : index
      %c0_20 = arith.constant 0 : index
      %24 = vector.load %arg5[%c0_19, %c0_20] : memref<64x4xf32, #tpu.memory_space<vmem>>, vector<64x4xf32>
      %cst_21 = arith.constant dense<0.000000e+00> : vector<1x64xf32>
      %25 = tpu.matmul %23, %24, %cst_21 {dimension_numbers = #tpu.dot_dimension_numbers<[1], [1], [0], [0], [0, 0, 1, 0], [], []>} : vector<1x4xf32>, vector<64x4xf32>, vector<1x64xf32> -> vector<1x64xf32>
      %c0_22 = arith.constant 0 : index
      %c0_23 = arith.constant 0 : index
      %26 = vector.load %arg6[%c0_22, %c0_23] : memref<1x64xf32, #tpu.memory_space<vmem>>, vector<1x64xf32>
      %27 = arith.addf %25, %26 : vector<1x64xf32>
      %28 = vector.shape_cast %27 : vector<1x64xf32> to vector<1x1x64xf32>
      %c0_24 = arith.constant 0 : index
      %c0_25 = arith.constant 0 : index
      %c0_26 = arith.constant 0 : index
      %29 = vector.load %arg7[%c0_24, %c0_25, %c0_26] : memref<1x1x64xf32, #tpu.memory_space<vmem>>, vector<1x1x64xf32>
      tpu.vector_store %arg7[%c0_24, %c0_25, %c0_26], %28 {strides = array<i32>} : memref<1x1x64xf32, #tpu.memory_space<vmem>>, vector<1x1x64xf32>,
    } else {
    }
    return
  }
  func.func @transform_0(%arg0: i32, %arg1: i32) -> (i32, i32, i32) {
    %c0_i32 = arith.constant 0 : i32
    %c0_i32_0 = arith.constant 0 : i32
    return %arg0, %c0_i32, %arg1 : i32, i32, i32
  }
  func.func @transform_1(%arg0: i32, %arg1: i32) -> (i32, i32) {
    %c0_i32 = arith.constant 0 : i32
    %c0_i32_0 = arith.constant 0 : i32
    %c0_i32_1 = arith.constant 0 : i32
    return %c0_i32, %c0_i32_0 : i32, i32
  }
  func.func @transform_2(%arg0: i32, %arg1: i32) -> (i32, i32) {
    %c0_i32 = arith.constant 0 : i32
    %c0_i32_0 = arith.constant 0 : i32
    %c0_i32_1 = arith.constant 0 : i32
    return %c0_i32, %c0_i32_0 : i32, i32
  }
  func.func @transform_3(%arg0: i32, %arg1: i32) -> (i32, i32) {
    %c0_i32 = arith.constant 0 : i32
    %c0_i32_0 = arith.constant 0 : i32
    %c0_i32_1 = arith.constant 0 : i32
    return %c0_i32, %c0_i32_0 : i32, i32
  }
  func.func @transform_4(%arg0: i32, %arg1: i32) -> (i32, i32) {
    %c0_i32 = arith.constant 0 : i32
    %c0_i32_0 = arith.constant 0 : i32
    %c0_i32_1 = arith.constant 0 : i32
    return %c0_i32, %c0_i32_0 : i32, i32
  }
  func.func @transform_5(%arg0: i32, %arg1: i32) -> (i32, i32, i32) {
    %c0_i32 = arith.constant 0 : i32
    %c0_i32_0 = arith.constant 0 : i32
    %c0_i32_1 = arith.constant 0 : i32
    return %arg0, %c0_i32, %c0_i32_0 : i32, i32, i32
  }
}

</mosaic_0001>

<bundles_post_ra>
// kernel: channel_attention.1
= control target key start
LH: loop header
LB: loop body
LE: loop exit
PB: predicated region body
PF: predicated region fallthrough
CT: control target
= control target key end

     0   :  { %10 = vsyncpa [#allocation4], 0  ;;  %s1879_s0 = inlined_call_operand.vmem [shape: f32[2,64,256], index: 0, kind: input, shape index: {}]   ;;  %s1880_s1 = inlined_call_operand.vmem [shape: f32[4,64], index: 1, kind: input, shape index: {}]   ;;  %s1881_s2 = inlined_call_operand.vmem [shape: f32[1,4], index: 2, kind: input, shape index: {}]   ;;  %s1882_s3 = inlined_call_operand.vmem [shape: f32[64,4], index: 3, kind: input, shape index: {}]   ;;  %s1883_s4 = inlined_call_operand.vmem [shape: f32[1,64], index: 4, kind: input, shape index: {}]   ;;  %s1884_s5 = inlined_call_operand.hbm [shape: f32[2,1,64], index: 5, kind: output, shape index: {}]  }
   0x1   :  { %12 = vsyncpa [#allocation4 + $0x1], 0  ;;  %s1563_s18 = smov 0   ;;  %s1565_s19 = smov 0  }
   0x2   :  { %s1567_s20 = smov 0   ;;  %s1569_s21 = smov 0  }
   0x3   :  { %s1571_s22 = smov 0   ;;  %s1573_s23 = smov 0  }
   0x4 LB: > { %s1328_s24 = sadd.s32 4294967295, %s1525_s23   ;;  %s1329_s25 = sadd.s32 4294967294, %s1525_s23   ;;  %s1525_s23 = sphi %s1573_s23, %s18_s23   ;;  %s1521_s22 = sphi %s1571_s22, %s1891_s22   ;;  %s1517_s21 = sphi %s1569_s21, %s1890_s21   ;;  %s1513_s20 = sphi %s1567_s20, %s1889_s20   ;;  %s1509_s19 = sphi %s1565_s19, %s1888_s19   ;;  %s1505_s18 = sphi %s1563_s18, %s1887_s18  }
   0x5   : > { %s30_s26 = sadd.s32 1, %s1521_s22  ;;  %s149_s27 = sadd.s32 1, %s1513_s20 }
   0x6   : > { %p32_p0 = scmp.ge.s32.totalorder %s30_s26, 2  ;;  %p159_p1 = scmp.ne.s32.totalorder %s1513_s20, %s1509_s19 }
   0x7   : > { %p160_p2 = scmp.eq.s32.totalorder %s1328_s24, 1  ;;  %p165_p3 = scmp.ne.s32.totalorder %s1509_s19, %s1505_s18 }
   0x8   : > { %s1893_s26 = smov (%p32_p0, %s30_s26), 0  ;;  %p166_p5 = scmp.eq.s32.totalorder %s1329_s25, 1 }
   0x9   : > { %p1603_p4 = por %p160_p2, %p159_p1  ;;  %s146_s29 = ssub.s32 %s1521_s22, %s1893_s26 }
   0xa   : > { %p1332_p6 = scmp.ge.s32.totalorder %s1525_s23, 1  ;;  %p147_p7 = scmp.eq.s32.totalorder %s146_s29, 0 }
   0xb   : > { %p1610_p8 = por %p166_p5, %p165_p3  ;;  %p209_p9 = scmp.lt.s32.totalorder %s1525_s23, 3 }
   0xc   : > { %s1616_s6 = scalar_select %p147_p7, %s1513_s20, %s149_s27  }
   0xd   : > { %p210_p10 = pnand %p1332_p6, %p209_p9 }
   0xe   : > { %p241_p11 = scmp.lt.s32.totalorder (!%p210_p10), %s1517_s21, 1  ;;  %s238_s17 = sand.u32 (!%p210_p10), 1, %s1509_s19  }
   0xf   : > { %213 = sbr.rel (%p210_p10) target bundleno = 778 (0x30a), region = 40  ;;  %s1346_s27 = sshll.u32 (!%p210_p10), %s1517_s21, 4 }
  0x10   : > { %s239_s29 = scalar_lea.vmem (!%p210_p10), [#allocation3], %s238_s17  ;;  %s1838_s10 = scalar_lea.hbm (!%p210_p10), %s1884_s5, %s1346_s27 }
  0x14   : > { %s242_s7 = scalar_select %p241_p11, %s1517_s21, 1  ;;  %v1527_v24 = vmov 0   ;;  %v305_v25 = vlaneseq  ;;  %v1528_v26 = vmov 1966171168   ;;  %vm254_vm0 = vcmask 516096  }
  0x15   : > { %1445 = vset.pattern.permute.xlu0 %v1527_v24  ;;  %1446 = vset.pattern.permute.xlu1 %v1527_v24  ;;  %v566_v27 = vunpack.c.l.s4 %v1528_v26  ;;  %vm1056_vm1 = vcmask 523264   ;;  %vm1531_vm2 = vmmov 0   ;;  %vm1147_vm3 = vcmask 31744   ;;  %s1532_s21 = smov [#allocation3]  }
  0x16   : > { %s1349_s8 = sshll.u32 %s242_s7, 7  ;;  %v1624_v28 = vshrl.u32 %v305_v25, 7  ;;  %vm988_vm4 = vcmask 130112   ;;  %vm995_vm5 = vcmask 195712   ;;  %vm1002_vm6 = vcmask 261312   ;;  %s1259_s7 = sshll.u32 %s239_s29, 4  ;;  %s1260_s7 = int_to_ptr.vmem [resolvable:$true] %s1259_s7 }
  0x17   : > { %s248_s11 = scalar_lea.vmem %s1879_s0, %s1349_s8  ;;  %v567_v29 = vunpack.c.0.s8 %v566_v27  ;;  %vm1009_vm7 = vcmask 326912   ;;  %vm1016_vm8 = vcmask 392512   ;;  %vm1023_vm9 = vcmask 458112   ;;  %s1449_s12 = scalar_lea.vmem %s1260_s7, 16 }
  0x18   : > { %v256_v0 = vld [vmem:[%s248_s11] sm:$0xff]  ;;  %v257_v1 = vld [vmem:[%s248_s11 + $0x8] sm:$0xff]  ;;  %v258_v2 = vld [vmem:[%s248_s11 + $0x10] sm:$0xff]  ;;  %v1627_v30 = vsub.s32 0, %v1624_v28  ;;  %v1630_v31 = vsub.s32 1, %v1624_v28  ;;  %v1633_v32 = vsub.s32 2, %v1624_v28  ;;  %p1450_p12 = scmp.ne.s32.totalorder %s1260_s7, %s1449_s12 }
  0x19   : > { %v272_v3 = vmax.f32 %v256_v0, %v257_v1  ;;  %v259_v4 = vld [vmem:[%s248_s11 + $0x18] sm:$0xff]  ;;  %v260_v5 = vld [vmem:[%s248_s11 + $0x20] sm:$0xff]  ;;  %v261_v6 = vld [vmem:[%s248_s11 + $0x28] sm:$0xff]  ;;  %v1636_v33 = vsub.s32 3, %v1624_v28  ;;  %v1639_v34 = vsub.s32 4, %v1624_v28  ;;  %v1642_v35 = vsub.s32 5, %v1624_v28 }
  0x1a   : > { %v278_v7 = vmax.f32 %v260_v5, %v261_v6  ;;  %v262_v8 = vld [vmem:[%s248_s11 + $0x30] sm:$0xff]  ;;  %v263_v9 = vld [vmem:[%s248_s11 + $0x38] sm:$0xff]  ;;  %v275_v10 = vmax.f32 %v258_v2, %v259_v4  ;;  %v264_v12 = vld [vmem:[%s248_s11 + $0x40] sm:$0xff]  ;;  %v1645_v36 = vsub.s32 6, %v1624_v28  ;;  %v1648_v37 = vsub.s32 7, %v1624_v28  ;;  %p1451_p13 = pnand %p1450_p12, %p1603_p4  ;;  %s1453_s13 = sshll.u32 %s1532_s21, 4  ;;  %s1454_s13 = int_to_ptr.vmem [resolvable:$false] %s1453_s13 }
  0x1b   : > { %273 = vmax.xlane.f32.xlu0 %v272_v3  ;;  %v281_v11 = vmax.f32 %v262_v8, %v263_v9  ;;  %v265_v13 = vld [vmem:[%s248_s11 + $0x48] sm:$0xff]  ;;  %v266_v14 = vld [vmem:[%s248_s11 + $0x50] sm:$0xff]  ;;  %v267_v15 = vld [vmem:[%s248_s11 + $0x58] sm:$0xff]  ;;  %v1651_v39 = vsub.s32 %v567_v29, %v1624_v28  ;;  %vm1030_vm10 = vcmask 523712   ;;  %s1455_s14 = scalar_lea.vmem %s1454_s13, 32  ;;  %p1456_p1 = scmp.lt.s32.totalorder %s1260_s7, %s1454_s13 }
  0x1c   : > { %279 = vmax.xlane.f32.xlu1 %v278_v7  ;;  %v284_v16 = vmax.f32 %v264_v12, %v265_v13  ;;  %v287_v17 = vmax.f32 %v266_v14, %v267_v15  ;;  %v268_v18 = vld [vmem:[%s248_s11 + $0x60] sm:$0xff]  ;;  %v269_v19 = vld [vmem:[%s248_s11 + $0x68] sm:$0xff]  ;;  %v270_v20 = vld [vmem:[%s248_s11 + $0x70] sm:$0xff]  ;;  %p1452_p0 = pneg %p1451_p13  ;;  %p1457_p2 = scmp.lt.s32.totalorder %s1455_s14, %s1449_s12 }
  0x1d   : > { %v271_v21 = vld [vmem:[%s248_s11 + $0x78] sm:$0xff]  ;;  %v290_v22 = vmax.f32 %v268_v18, %v269_v19  ;;  %s1247_s11 = scalar_lea.sflag [#allocation4], %s238_s17 }
  0x1e   : > { %v293_v23 = vmax.f32 %v270_v20, %v271_v21  ;;  %p1458_p3 = por %p1457_p2, %p1456_p1 }
  0x1f   : > { %276 = vmax.xlane.f32.xlu0 %v275_v10 }
  0x20   : > { %282 = vmax.xlane.f32.xlu1 %v281_v11  ;;  %p1459_p5 = pnand %p1458_p3, %p1452_p0 }
  0x23   : > { %285 = vmax.xlane.f32.xlu0 %v284_v16 }
  0x24   : > { %288 = vmax.xlane.f32.xlu1 %v287_v17 }
  0x27   : > { %291 = vmax.xlane.f32.xlu0 %v290_v22 }
  0x28   : > { %294 = vmax.xlane.f32.xlu1 %v293_v23 }
  0xa4   : > { %v274_v38 = vpop.xlane.xlu0 %273 }
  0xa5   : > { %v280_v40 = vpop.xlane.xlu1 %279  ;;  %v308_v41 = vrot.slane %v274_v38, %v1627_v30  ;;  %v312_v42 = vrot.slane %v274_v38, %v1630_v31  ;;  %v316_v43 = vrot.slane %v274_v38, %v1633_v32  ;;  %v320_v44 = vrot.slane %v274_v38, %v1636_v33 }
  0xa6   : > { %v324_v45 = vrot.slane %v274_v38, %v1639_v34  ;;  %v328_v46 = vrot.slane %v274_v38, %v1642_v35  ;;  %v332_v47 = vrot.slane %v274_v38, %v1645_v36  ;;  %v336_v48 = vrot.slane %v274_v38, %v1648_v37 }
  0xa7   : > { %v561_v49 = vcombine.low %v308_v41, %v312_v42  ;;  %v562_v50 = vcombine.low %v316_v43, %v320_v44  ;;  %v372_v51 = vrot.slane %v280_v40, %v1627_v30  ;;  %v376_v52 = vrot.slane %v280_v40, %v1630_v31 }
  0xa8   : > { %v277_v53 = vpop.xlane.xlu0 %276  ;;  %v563_v54 = vcombine.low %v324_v45, %v328_v46  ;;  %v564_v55 = vcombine.low %v332_v47, %v336_v48  ;;  %v380_v56 = vrot.slane %v280_v40, %v1633_v32  ;;  %v384_v57 = vrot.slane %v280_v40, %v1636_v33 }
  0xa9   : > { %v571_v58 = vrot.slane %v561_v49, %v1651_v39  ;;  %v578_v59 = vrot.slane %v562_v50, %v1651_v39  ;;  %v340_v60 = vrot.slane %v277_v53, %v1627_v30  ;;  %v344_v61 = vrot.slane %v277_v53, %v1630_v31  ;;  %v283_v14 = vpop.xlane.xlu1 %282 }
  0xaa   : > { %v585_v62 = vrot.slane %v563_v54, %v1651_v39  ;;  %v592_v63 = vrot.slane %v564_v55, %v1651_v39  ;;  %v348_v0 = vrot.slane %v277_v53, %v1633_v32  ;;  %v352_v1 = vrot.slane %v277_v53, %v1636_v33 }
  0xab   : > { %v593_v2 = vcombine.low %v571_v58, %v578_v59  ;;  %v356_v3 = vrot.slane %v277_v53, %v1639_v34  ;;  %v360_v4 = vrot.slane %v277_v53, %v1642_v35  ;;  %v364_v5 = vrot.slane %v277_v53, %v1645_v36 }
  0xac   : > { %v594_v6 = vcombine.low %v585_v62, %v592_v63  ;;  %v368_v7 = vrot.slane %v277_v53, %v1648_v37  ;;  %v610_v8 = vcombine.low %v340_v60, %v344_v61  ;;  %v611_v9 = vcombine.low %v348_v0, %v352_v1  ;;  %v286_v50 = vpop.xlane.xlu0 %285 }
  0xad   : > { %v601_v10 = vrot.slane %v593_v2, %v1651_v39  ;;  %v612_v11 = vcombine.low %v356_v3, %v360_v4  ;;  %v388_v12 = vrot.slane %v280_v40, %v1639_v34  ;;  %v392_v13 = vrot.slane %v280_v40, %v1642_v35  ;;  %v289_v3 = vpop.xlane.xlu1 %288 }
  0xae   : > { %v608_v15 = vrot.slane %v594_v6, %v1651_v39  ;;  %v613_v16 = vcombine.low %v364_v5, %v368_v7  ;;  %v620_v17 = vrot.slane %v610_v8, %v1651_v39  ;;  %v627_v18 = vrot.slane %v611_v9, %v1651_v39 }
  0xaf   : > { %v634_v19 = vrot.slane %v612_v11, %v1651_v39  ;;  %v396_v20 = vrot.slane %v280_v40, %v1645_v36  ;;  %v400_v21 = vrot.slane %v280_v40, %v1648_v37  ;;  %v659_v22 = vcombine.low %v372_v51, %v376_v52 }
  0xb0   : > { %v609_v23 = vcombine.low %v601_v10, %v608_v15  ;;  %v641_v24 = vrot.slane %v613_v16, %v1651_v39  ;;  %v642_v26 = vcombine.low %v620_v17, %v627_v18  ;;  %v660_v27 = vcombine.low %v380_v56, %v384_v57 }
  0xb1   : > { %v661_v29 = vcombine.low %v388_v12, %v392_v13  ;;  %v662_v38 = vcombine.low %v396_v20, %v400_v21  ;;  %v669_v41 = vrot.slane %v659_v22, %v1651_v39  ;;  %v404_v42 = vrot.slane %v283_v14, %v1627_v30 }
  0xb2   : > { %954 = vperm.xlu0 %1445, %v609_v23   ;;  %v643_v43 = vcombine.low %v634_v19, %v641_v24  ;;  %v650_v44 = vrot.slane %v642_v26, %v1651_v39  ;;  %v676_v45 = vrot.slane %v660_v27, %v1651_v39  ;;  %v408_v40 = vrot.slane %v283_v14, %v1630_v31 }
  0xb3   : > { %v683_v46 = vrot.slane %v661_v29, %v1651_v39  ;;  %v690_v47 = vrot.slane %v662_v38, %v1651_v39  ;;  %v412_v48 = vrot.slane %v283_v14, %v1633_v32  ;;  %v416_v49 = vrot.slane %v283_v14, %v1636_v33  ;;  %v292_v38 = vpop.xlane.xlu0 %291 }
  0xb4   : > { %v657_v51 = vrot.slane %v643_v43, %v1651_v39  ;;  %v691_v52 = vcombine.low %v669_v41, %v676_v45  ;;  %v420_v53 = vrot.slane %v283_v14, %v1639_v34  ;;  %v424_v54 = vrot.slane %v283_v14, %v1642_v35 }
  0xb5   : > { %v692_v55 = vcombine.low %v683_v46, %v690_v47  ;;  %v428_v56 = vrot.slane %v283_v14, %v1645_v36  ;;  %v432_v57 = vrot.slane %v283_v14, %v1648_v37  ;;  %v708_v58 = vcombine.low %v404_v42, %v408_v40 }
  0xb6   : > { %v658_v59 = vcombine.low %v650_v44, %v657_v51  ;;  %v699_v60 = vrot.slane %v691_v52, %v1651_v39  ;;  %v709_v61 = vcombine.low %v412_v48, %v416_v49  ;;  %v710_v62 = vcombine.low %v420_v53, %v424_v54 }
  0xb7   : > { %v706_v63 = vrot.slane %v692_v55, %v1651_v39  ;;  %v711_v0 = vcombine.low %v428_v56, %v432_v57  ;;  %v718_v1 = vrot.slane %v708_v58, %v1651_v39  ;;  %v436_v2 = vrot.slane %v286_v50, %v1627_v30 }
  0xb8   : > { %957 = vperm.xlu1 %1446, %v658_v59   ;;  %v725_v4 = vrot.slane %v709_v61, %v1651_v39  ;;  %v732_v5 = vrot.slane %v710_v62, %v1651_v39  ;;  %v440_v6 = vrot.slane %v286_v50, %v1630_v31  ;;  %v444_v7 = vrot.slane %v286_v50, %v1633_v32 }
  0xb9   : > { %v707_v8 = vcombine.low %v699_v60, %v706_v63  ;;  %v739_v9 = vrot.slane %v711_v0, %v1651_v39  ;;  %v448_v10 = vrot.slane %v286_v50, %v1636_v33  ;;  %v452_v11 = vrot.slane %v286_v50, %v1639_v34  ;;  %v295_v60 = vpop.xlane.xlu1 %294 }
  0xba   : > { %v740_v12 = vcombine.low %v718_v1, %v725_v4  ;;  %v456_v13 = vrot.slane %v286_v50, %v1642_v35  ;;  %v460_v14 = vrot.slane %v286_v50, %v1645_v36  ;;  %v464_v15 = vrot.slane %v286_v50, %v1648_v37 }
  0xbb   : > { %v741_v16 = vcombine.low %v732_v5, %v739_v9  ;;  %v757_v17 = vcombine.low %v436_v2, %v440_v6  ;;  %v758_v18 = vcombine.low %v444_v7, %v448_v10  ;;  %v468_v19 = vrot.slane %v289_v3, %v1627_v30 }
  0xbc   : > { %960 = vperm.xlu1 %1446, %v707_v8   ;;  %v748_v20 = vrot.slane %v740_v12, %v1651_v39  ;;  %v759_v21 = vcombine.low %v452_v11, %v456_v13  ;;  %v760_v22 = vcombine.low %v460_v14, %v464_v15  ;;  %v472_v23 = vrot.slane %v289_v3, %v1630_v31 }
  0xbd   : > { %v755_v24 = vrot.slane %v741_v16, %v1651_v39  ;;  %v767_v26 = vrot.slane %v757_v17, %v1651_v39  ;;  %v774_v27 = vrot.slane %v758_v18, %v1651_v39  ;;  %v476_v29 = vrot.slane %v289_v3, %v1633_v32 }
  0xbe   : > { %v781_v41 = vrot.slane %v759_v21, %v1651_v39  ;;  %v788_v42 = vrot.slane %v760_v22, %v1651_v39  ;;  %v480_v43 = vrot.slane %v289_v3, %v1636_v33  ;;  %v484_v44 = vrot.slane %v289_v3, %v1639_v34 }
  0xbf   : > { %v756_v45 = vcombine.low %v748_v20, %v755_v24  ;;  %v789_v40 = vcombine.low %v767_v26, %v774_v27  ;;  %v488_v46 = vrot.slane %v289_v3, %v1642_v35  ;;  %v492_v47 = vrot.slane %v289_v3, %v1645_v36 }
  0xc0   : > { %v790_v48 = vcombine.low %v781_v41, %v788_v42  ;;  %v496_v49 = vrot.slane %v289_v3, %v1648_v37  ;;  %v806_v50 = vcombine.low %v468_v19, %v472_v23  ;;  %v807_v51 = vcombine.low %v476_v29, %v480_v43 }
  0xc1   : > { %963 = vperm.xlu1 %1446, %v756_v45   ;;  %v797_v52 = vrot.slane %v789_v40, %v1651_v39  ;;  %v808_v53 = vcombine.low %v484_v44, %v488_v46  ;;  %v500_v54 = vrot.slane %v292_v38, %v1627_v30  ;;  %v504_v55 = vrot.slane %v292_v38, %v1630_v31 }
  0xc2   : > { %v804_v56 = vrot.slane %v790_v48, %v1651_v39  ;;  %v809_v57 = vcombine.low %v492_v47, %v496_v49  ;;  %v816_v58 = vrot.slane %v806_v50, %v1651_v39  ;;  %v823_v59 = vrot.slane %v807_v51, %v1651_v39  ;;  %v1054_v49 = vld [vmem:[%s1880_s1] sm:$0xf]  ;;  %v1145_v51 = vld [vmem:[%s1882_s3 + $0x38] sm:$0xff] }
  0xc3   : > { %v830_v61 = vrot.slane %v808_v53, %v1651_v39  ;;  %v508_v62 = vrot.slane %v292_v38, %v1633_v32  ;;  %v512_v63 = vrot.slane %v292_v38, %v1636_v33  ;;  %v516_v0 = vrot.slane %v292_v38, %v1639_v34 }
  0xc4   : > { %v805_v1 = vcombine.low %v797_v52, %v804_v56  ;;  %v837_v2 = vrot.slane %v809_v57, %v1651_v39  ;;  %v838_v3 = vcombine.low %v816_v58, %v823_v59  ;;  %v520_v4 = vrot.slane %v292_v38, %v1642_v35  ;;  %v1144_v52 = vld [vmem:[%s1882_s3 + $0x30] sm:$0xff] }
  0xc5   : > { %v524_v5 = vrot.slane %v292_v38, %v1645_v36  ;;  %v528_v6 = vrot.slane %v292_v38, %v1648_v37  ;;  %v855_v7 = vcombine.low %v500_v54, %v504_v55  ;;  %v856_v8 = vcombine.low %v508_v62, %v512_v63 }
  0xc6   : > { %966 = vperm.xlu1 %1446, %v805_v1   ;;  %v839_v9 = vcombine.low %v830_v61, %v837_v2  ;;  %v846_v10 = vrot.slane %v838_v3, %v1651_v39  ;;  %v857_v11 = vcombine.low %v516_v0, %v520_v4  ;;  %v532_v12 = vrot.slane %v295_v60, %v1627_v30 }
  0xc7   : > { %v858_v13 = vcombine.low %v524_v5, %v528_v6  ;;  %v865_v14 = vrot.slane %v855_v7, %v1651_v39  ;;  %v872_v15 = vrot.slane %v856_v8, %v1651_v39  ;;  %v536_v16 = vrot.slane %v295_v60, %v1630_v31 }
  0xc8   : > { %v853_v17 = vrot.slane %v839_v9, %v1651_v39  ;;  %v879_v18 = vrot.slane %v857_v11, %v1651_v39  ;;  %v540_v19 = vrot.slane %v295_v60, %v1633_v32  ;;  %v544_v20 = vrot.slane %v295_v60, %v1636_v33 }
  0xc9   : > { %v886_v21 = vrot.slane %v858_v13, %v1651_v39  ;;  %v887_v22 = vcombine.low %v865_v14, %v872_v15  ;;  %v548_v30 = vrot.slane %v295_v60, %v1639_v34  ;;  %v552_v23 = vrot.slane %v295_v60, %v1642_v35 }
  0xca   : > { %v854_v24 = vcombine.low %v846_v10, %v853_v17  ;;  %v556_v26 = vrot.slane %v295_v60, %v1645_v36  ;;  %v560_v31 = vrot.slane %v295_v60, %v1648_v37  ;;  %v904_v27 = vcombine.low %v532_v12, %v536_v16 }
  0xcb   : > { %v888_v29 = vcombine.low %v879_v18, %v886_v21  ;;  %v895_v38 = vrot.slane %v887_v22, %v1651_v39  ;;  %v905_v41 = vcombine.low %v540_v19, %v544_v20  ;;  %v906_v32 = vcombine.low %v548_v30, %v552_v23 }
  0xcc   : > { %969 = vperm.xlu1 %1446, %v854_v24   ;;  %v907_v33 = vcombine.low %v556_v26, %v560_v31  ;;  %v914_v42 = vrot.slane %v904_v27, %v1651_v39  ;;  %v1529_v48 = vmov -inf   ;;  %v1530_v50 = vmov 0.0  }
  0xcd   : > { %v902_v43 = vrot.slane %v888_v29, %v1651_v39  ;;  %v921_v34 = vrot.slane %v905_v41, %v1651_v39  ;;  %v928_v35 = vrot.slane %v906_v32, %v1651_v39  ;;  %255 = vst.msk [vmem:[#allocation2] sm:$0x1] %vm254_vm0, %v1529_v48  ;;  %1361 = vmatprep.subr.mxu0 %v1530_v50  ;;  %v978_v56 = vand.u32 127, %v305_v25  ;;  %v1143_v41 = vld [vmem:[%s1882_s3 + $0x28] sm:$0xff]  ;;  %v1142_v32 = vld [vmem:[%s1882_s3 + $0x20] sm:$0xff] }
  0xce   : > { %v935_v36 = vrot.slane %v907_v33, %v1651_v39  ;;  %1366 = vmatprep.subr.mxu1 %v1530_v50  ;;  %1362 = vmatpush3.xpose.msk.msra.mxu0 %vm1056_vm1, %v1054_v49  ;;  %v1140_v33 = vld [vmem:[%s1882_s3 + $0x10] sm:$0xff]  ;;  %v1146_v48 = vld [vmem:[%s1883_s4] sm:$0x1] }
  0xcf   : > { %v903_v44 = vcombine.low %v895_v38, %v902_v43  ;;  %v936_v37 = vcombine.low %v914_v42, %v921_v34  ;;  %1363 = vmatprep.mubr.msk.f32.mxu0 %vm1531_vm2, %v1530_v50  ;;  %1382 = vmatprep.mubr.msk.f32.mxu1 %vm1531_vm2, %v1530_v50  ;;  %v983_v58 = vadd.s32 4294967288, %v978_v56  ;;  %v990_v59 = vadd.s32 4294967280, %v978_v56  ;;  %v1139_v42 = vld [vmem:[%s1882_s3 + $0x8] sm:$0xff]  ;;  %v1138_v43 = vld [vmem:[%s1882_s3] sm:$0xff] }
  0xd0   : > { %v937_v45 = vcombine.low %v928_v35, %v935_v36  ;;  %1367 = vmatpush3.xpose.msk.msra.mxu1 %vm1147_vm3, %v1145_v51  ;;  %v997_v60 = vadd.s32 4294967272, %v978_v56  ;;  %v1004_v61 = vadd.s32 4294967264, %v978_v56  ;;  %v1011_v63 = vadd.s32 4294967256, %v978_v56  ;;  %v1055_v34 = vld [vmem:[%s1881_s2] sm:$0x1] }
  0xd1   : > { %972 = vperm.xlu1 %1446, %v903_v44   ;;  %v944_v40 = vrot.slane %v936_v37, %v1651_v39  ;;  %1368 = vmatprep.subr.mxu1 %v1530_v50  ;;  %v986_v62 = vsub.s32 %v983_v58, %v1624_v28  ;;  %v993_v0 = vsub.s32 %v990_v59, %v1624_v28  ;;  %v1018_v2 = vadd.s32 4294967248, %v978_v56 }
  0xd2   : > { %v951_v46 = vrot.slane %v937_v45, %v1651_v39  ;;  %v981_v3 = vsub.s32 %v978_v56, %v1624_v28  ;;  %v1000_v4 = vsub.s32 %v997_v60, %v1624_v28  ;;  %v1007_v6 = vsub.s32 %v1004_v61, %v1624_v28 }
  0xd3   : > { %v1014_v7 = vsub.s32 %v1011_v63, %v1624_v28  ;;  %v1025_v8 = vadd.s32 4294967240, %v978_v56  ;;  %v1021_v10 = vsub.s32 %v1018_v2, %v1624_v28 }
  0xd4   : > { %v952_v47 = vcombine.low %v944_v40, %v951_v46  ;;  %1369 = vmatpush3.xpose.msk.msra.mxu1 %vm1147_vm3, %v1144_v52  ;;  %v296_v27 = vld [vmem:[#allocation2] sm:$0x1] }
  0xd5   : > { %1370 = vmatprep.subr.mxu1 %v1530_v50  ;;  %v1028_v17 = vsub.s32 %v1025_v8, %v1624_v28 }
  0xd6   : > { %975 = vperm.xlu1 %1446, %v952_v47  }
  0xd8   : > { %1371 = vmatpush3.xpose.msk.msra.mxu1 %vm1147_vm3, %v1143_v41 }
  0xd9   : > { %1372 = vmatprep.subr.mxu1 %v1530_v50 }
  0xdc   : > { %1373 = vmatpush3.xpose.msk.msra.mxu1 %vm1147_vm3, %v1142_v32 }
  0xdd   : > { %1374 = vmatprep.subr.mxu1 %v1530_v50 }
 0x12d   : > { %v955_v5 = vpop.permute.xlu0 %954 }
 0x12e   : > { %v982_v11 = vrot.slane %v955_v5, %v981_v3 }
 0x133   : > { %v958_v53 = vpop.permute.xlu1 %957 }
 0x134   : > { %v987_v25 = vrot.slane %v958_v53, %v986_v62 }
 0x136   : > { %v989_v15 = vsel %vm988_vm4, %v987_v25, %v982_v11 }
 0x137   : > { %v961_v54 = vpop.permute.xlu1 %960 }
 0x138   : > { %v994_v9 = vrot.slane %v961_v54, %v993_v0 }
 0x13a   : > { %v996_v18 = vsel %vm995_vm5, %v994_v9, %v989_v15 }
 0x13c   : > { %v964_v55 = vpop.permute.xlu1 %963 }
 0x13d   : > { %v1001_v12 = vrot.slane %v964_v55, %v1000_v4 }
 0x13f   : > { %v1003_v20 = vsel %vm1002_vm6, %v1001_v12, %v996_v18 }
 0x141   : > { %v967_v57 = vpop.permute.xlu1 %966 }
 0x142   : > { %v1008_v14 = vrot.slane %v967_v57, %v1007_v6 }
 0x144   : > { %v1010_v21 = vsel %vm1009_vm7, %v1008_v14, %v1003_v20 }
 0x147   : > { %v970_v1 = vpop.permute.xlu1 %969 }
 0x148   : > { %v1015_v16 = vrot.slane %v970_v1, %v1014_v7 }
 0x14a   : > { %v1017_v30 = vsel %vm1016_vm8, %v1015_v16, %v1010_v21 }
 0x14c   : > { %v973_v13 = vpop.permute.xlu1 %972 }
 0x14d   : > { %v1022_v19 = vrot.slane %v973_v13, %v1021_v10 }
 0x14f   : > { %v1024_v24 = vsel %vm1023_vm9, %v1022_v19, %v1017_v30 }
 0x151   : > { %v976_v22 = vpop.permute.xlu1 %975 }
 0x152   : > { %v1029_v23 = vrot.slane %v976_v22, %v1028_v17 }
 0x154   : > { %v1031_v26 = vsel %vm1030_vm10, %v1029_v23, %v1024_v24 }
 0x155   : > { %v1038_v31 = vrot.slane %v1031_v26, %v1651_v39 }
 0x157   : > { %v1045_v29 = vrot.slane %v1038_v31, %v1651_v39  ;;  %v1141_v39 = vld [vmem:[%s1882_s3 + $0x18] sm:$0xff] }
 0x158   : > { %1375 = vmatpush3.xpose.msk.msra.mxu1 %vm1147_vm3, %v1141_v39 }
 0x159   : > { %v1047_v38 = vmax.f32 %v296_v27, %v1045_v29  ;;  %1376 = vmatprep.subr.mxu1 %v1530_v50 }
 0x15b   : > { %1049 = vst.msk [vmem:[#allocation2] sm:$0x1] %vm254_vm0, %v1047_v38 }
 0x15c   : > { %1377 = vmatpush3.xpose.msk.msra.mxu1 %vm1147_vm3, %v1140_v33 }
 0x15d   : > { %1378 = vmatprep.subr.mxu1 %v1530_v50 }
 0x160   : > { %1379 = vmatpush3.xpose.msk.msra.mxu1 %vm1147_vm3, %v1139_v42 }
 0x161   : > { %1380 = vmatprep.subr.mxu1 %v1530_v50 }
 0x162   : > { %v1053_v28 = vld [vmem:[#allocation2] sm:$0x1] }
 0x163   : > { %1364 = vmatmul.mubr.msk.f32.vlgmr.msra.gmra.mxu0 %vm1056_vm1, %v1053_v28 }
 0x164   : > { %1381 = vmatpush3.xpose.msk.msra.mxu1 %vm1147_vm3, %v1138_v43 }
 0x223   : > { %v1129_v35 = vpop.f32.mrf.mxu0 }
 0x224   : > { %v1130_v36 = vadd.f32 %v1129_v35, %v1055_v34 }
 0x225   : > { %v1365_v44 = vpop.f32.mrf.mxu0 }
 0x226   : > { %v1134_v37 = vmul.f32 0.70710677, %v1130_v36  ;;  %v1133_v40 = vmul.f32 0.5, %v1130_v36 }
 0x228   : > { %1447 = verf.f32 %v1134_v37 }
 0x235   : > { %v1448_v45 = vpop.eup %1447 }
 0x236   : > { %v1136_v46 = vadd.f32 1.0, %v1448_v45 }
 0x238   : > { %v1137_v47 = vmul.f32 %v1136_v46, %v1133_v40 }
 0x23a   : > { %1383 = vmatmul.mubr.msk.f32.vlgmr.msra.gmra.mxu1 %vm1147_vm3, %v1137_v47 }
 0x2fa   : > { %v1241_v49 = vpop.f32.mrf.mxu1 }
 0x2fb   : > { %v1242_v50 = vadd.f32 %v1241_v49, %v1146_v48 }
 0x2fc   : > { %v1384_v51 = vpop.f32.mrf.mxu1 }
 0x2fd   : > { %1245 = vst.msk [vmem:[%s239_s29] sm:$0x1] %vm254_vm0, %v1242_v50 }
 0x2fe   : > { %1462 = shalt.err (!%p1459_p5)
}
 0x2ff   : > { %s1463_s15 = scalar_lea.hbm %s1838_s10, 16  ;;  %s1467_s24 = scalar_lea.hbm %s1884_s5, 32 }
 0x300   : > { %p1464_p6 = scmp.ne.s32.totalorder %s1838_s10, %s1463_s15  ;;  %p1468_p10 = scmp.lt.s32.totalorder %s1838_s10, %s1884_s5 }
 0x301   : > { %p1469_p11 = scmp.lt.s32.totalorder %s1467_s24, %s1463_s15 }
 0x302   : > { %p1465_p7 = pnand %p1464_p6, %p1603_p4 }
 0x303   : > { %p1470_p12 = por %p1469_p11, %p1468_p10 }
 0x304   : > { %p1466_p9 = pneg %p1465_p7 }
 0x306   : > { %p1471_p13 = pnand %p1470_p12, %p1466_p9 }
 0x308   : > { %1474 = shalt.err (!%p1471_p13)
}
 0x309   : > { %1385 = dma.vmem_to_hbm [thread:$0]  (%p1603_p4), %s1260_s7, 16, %s1838_s10, %s1247_s11  }
 0x30a PF: > { %p1391_p0 = scmp.ge.s32.totalorder %s1525_s23, 2  ;;  %s1271_s29 = sand.u32 1, %s1505_s18  }
 0x30b   : > { %s1272_s8 = scalar_lea.sflag [#allocation4], %s1271_s29 }
 0x30c   : > { %p1388_p1 = pnand %p1391_p0, %p1610_p8 }
 0x30e   : > { %p1389_p2 = pneg %p1388_p1 }
 0x310   : > { %1500 = dma.done.wait (%p1389_p2), %s1272_s8, 16  }
 0x311   : > { %1502 = vsyncadd (%p1389_p2), %s1272_s8, 4294967280  ;;  %s18_s23 = sadd.s32 1, %s1525_s23   ;;  %s1887_s18 = smov %s1509_s19 }
 0x312   : > { %p15_p3 = scmp.ge.s32.totalorder %s18_s23, 4   ;;  %s1888_s19 = smov %s1513_s20 }
 0x313   : > { %s1889_s20 = smov %s1616_s6  ;;  %s1890_s21 = smov %s1521_s22 }
 0x314   : > { %s1891_s22 = smov %s1893_s26  ;;  %17 = sbr.rel (!%p15_p3) target bundleno = 4 (0x4), region = 83 }
 0x319   :  { %1276 = vsyncpa [#allocation4], 1 }
 0x31a   :  { %1278 = vsyncpa [#allocation4 + $0x1], 1 }

</bundles_post_ra>
